<compile_context>
chip_gen: v7x
topology: tpu7x:2x2x1
jax: 0.10.0
libtpu: 0.0.40
codegen_flags: <defaults>
</compile_context>

<pallas_src>
import jax
import jax.numpy as jnp
from jax.experimental import pallas as pl
from jax.experimental.pallas import tpu as pltpu


def _fixed_output_kernel(t_hbm_ref, o_hbm_ref, copy_sem):
    # One direct HBM->HBM DMA of the stored constant into the output buffer.
    cp = pltpu.make_async_copy(t_hbm_ref, o_hbm_ref, copy_sem)
    cp.start()
    cp.wait()


def fixed_output(x: jax.Array, fixed_tensor: jax.Array) -> jax.Array:
    """Pallas equivalent of FixedOutput(tensor)(x) -> tensor."""
    del x  # FixedOutput.forward ignores its input; do NOT DMA it.

    return pl.pallas_call(
        _fixed_output_kernel,
        out_shape=jax.ShapeDtypeStruct(fixed_tensor.shape, fixed_tensor.dtype),
        # Leave both operands in HBM; the kernel moves bytes with a single DMA,
        # so nothing is staged through (or limited by) VMEM.
        in_specs=[pl.BlockSpec(memory_space=pl.ANY)],
        out_specs=pl.BlockSpec(memory_space=pl.ANY),
        scratch_shapes=[pltpu.SemaphoreType.DMA(())],
    )(fixed_tensor)


def fixed_output_fast(x: jax.Array, fixed_tensor: jax.Array) -> jax.Array:
    """The actual optimum per the perf review: no kernel launch at all."""
    del x
    return fixed_tensor


if __name__ == "__main__":
    key = jax.random.PRNGKey(0)
    k_x, k_t, k_t2 = jax.random.split(key, 3)

    # Input to forward() — ignored by the module, present only for API parity.
    x = jax.random.normal(k_x, (2, 4, 16, 16), dtype=jnp.float32)

    # The constant tensor captured in __init__ (deterministic, synthetic).
    fixed_tensor = jax.random.normal(k_t, (2, 4, 16, 16), dtype=jnp.float32)

    out = fixed_output(x, fixed_tensor)
    out = jax.block_until_ready(out)

    # Semantics check: output must equal the stored tensor exactly (bitwise).
    assert out.shape == fixed_tensor.shape
    assert out.dtype == fixed_tensor.dtype
    assert bool(jnp.all(out == fixed_tensor))

    # Robustness check: a constant whose size is NOT a multiple of 128 (the
    # old fallback path) — handled identically by the HBM->HBM DMA.
    odd_tensor = jax.random.normal(k_t2, (3, 5, 7), dtype=jnp.float32)
    out_odd = jax.block_until_ready(fixed_output(x, odd_tensor))
    assert out_odd.shape == odd_tensor.shape
    assert bool(jnp.all(out_odd == odd_tensor))

    # Fast path (no kernel) agrees trivially.
    assert bool(jnp.all(fixed_output_fast(x, fixed_tensor) == fixed_tensor))

    print("KERNEL_OK")
</pallas_src>

<mosaic_0001>
module attributes {stable_mosaic.version = 11 : i64} {
  func.func @_fixed_output_kernel(%arg0: memref<2x4x16x16xf32, #tpu.memory_space<any>>, %arg1: memref<2x4x16x16xf32, #tpu.memory_space<any>>, %arg2: memref<!tpu.dma_semaphore, #tpu.memory_space<semaphore_mem>>) attributes {dimension_semantics = [], scalar_prefetch = 0 : i64, scratch_operands = 1 : i64, tpu.core_type = #tpu.core_type<tc>} {
    tpu.enqueue_dma source(%arg0 : memref<2x4x16x16xf32, #tpu.memory_space<any>>) target(%arg1 : memref<2x4x16x16xf32, #tpu.memory_space<any>>) target_semaphore(%arg2 : memref<!tpu.dma_semaphore, #tpu.memory_space<semaphore_mem>>)
    tpu.wait_dma2 semaphore(%arg2 : memref<!tpu.dma_semaphore, #tpu.memory_space<semaphore_mem>>) src(%arg0 : memref<2x4x16x16xf32, #tpu.memory_space<any>>) dst(%arg1 : memref<2x4x16x16xf32, #tpu.memory_space<any>>)
    return
  }
}

</mosaic_0001>

<bundles_post_ra>
// kernel: tpu_custom_call.1
= control target key start
LH: loop header
LB: loop body
LE: loop exit
PB: predicated region body
PF: predicated region fallthrough
CT: control target
= control target key end

     0   :  { %s36_s6 = smov [#allocation2]   ;;  %s37_s7 = smov [#allocation3]   ;;  %s55_s0 = inlined_call_operand.hbm [shape: f32[2,4,16,16], index: 0, kind: input, shape index: {}]   ;;  %s56_s1 = inlined_call_operand.hbm [shape: f32[2,4,16,16], index: 1, kind: output, shape index: {}]  }
   0x1   :  { %s38_s8 = smov 0  }
   0x2   :  { %18 = dma.general %s55_s0, 2048, %s56_s1, %s36_s6, %s37_s7, [#allocation4], %s38_s8, 0  }
   0x3   :  { %34 = dma.done.wait [#allocation2], 2048 }
   0x4   :  { %35 = vsyncadd [#allocation2], 4294965248 }
   0x5   :  { %24 = vsyncmov [#allocation2] }
   0x8   :  { %s25_s13 = vpop.sfrf %24 }
   0x9   :  { %p30_p0 = scmp.ne.s32.totalorder %s25_s13, 0 }
   0xb   :  { %29 = shalt.err (%p30_p0)  }

</bundles_post_ra>
